<compile_context>
chip_gen: v6e
topology: v6e:2x2x1
jax: 0.10.0
libtpu: 0.0.40
codegen_flags: <defaults>
</compile_context>

<pallas_src>
import jax
import jax.numpy as jnp
from jax.experimental import pallas as pl
from jax.experimental.pallas import tpu as pltpu

LANES = 128
MAX_TILE_ROWS = 2048   # 2048 * 128 * 4 B = 1 MiB per f32 input tile
NUM_CORES = 2          # leading parallel grid axis (megacore split on v7x)


def _make_mse_sum_kernel(tile_rows, total_rows, tiles_per_core, need_mask):
    """Build the kernel body with static tiling parameters baked in."""
    fold = tile_rows % 8 == 0

    def kernel(pred_ref, targ_ref, sum_ref, acc_ref):
        c = pl.program_id(0)   # core / parallel axis
        i = pl.program_id(1)   # reduction axis over row tiles

        @pl.when(i == 0)
        def _init():
            acc_ref[...] = jnp.zeros_like(acc_ref)

        d = pred_ref[...].astype(jnp.float32) - targ_ref[...].astype(jnp.float32)
        dd = d * d

        if need_mask:
            # Zero out rows past the end of the (possibly ragged / duplicated)
            # last tile.  Uses the *unclamped* global tile index.
            row0 = (c * tiles_per_core + i) * tile_rows
            row = jax.lax.broadcasted_iota(jnp.int32, dd.shape, 0) + row0
            dd = jnp.where(row < total_rows, dd, jnp.float32(0.0))

        if fold:
            # Sublane-folded partial sums: pure VPU adds, one per input vreg.
            part = dd.reshape(tile_rows // 8, 8, LANES).sum(axis=0)
        else:
            # Tiny single-tile case (rows < 8): one sublane reduce is fine.
            part = jnp.sum(dd, axis=0, keepdims=True)
        acc_ref[...] += part

        @pl.when(i == pl.num_programs(1) - 1)
        def _finalize():
            # Single cross-lane reduce + scalar SMEM write per core.
            sum_ref[0, 0] = jnp.sum(acc_ref[...])

    return kernel


def mse_loss(output_batch: jax.Array, input_batch: jax.Array) -> jax.Array:
    """MSE loss with 'mean' reduction, matching nn.MSELoss(reduction='mean')."""
    assert output_batch.shape == input_batch.shape, "shapes must match"
    n_elems = output_batch.size
    assert n_elems > 0

    # Flatten (layout-free) and keep the native dtype; the cast happens on load
    # inside the kernel so bf16/fp8 inputs stream at their native width.
    o_flat = output_batch.reshape(-1)
    i_flat = input_batch.reshape(-1)

    # Only pad when the element count is not lane-aligned (rare for NN
    # tensors).  Padded zeros contribute 0 to the squared-difference sum.
    rem = n_elems % LANES
    if rem:
        o_flat = jnp.pad(o_flat, (0, LANES - rem))
        i_flat = jnp.pad(i_flat, (0, LANES - rem))
    rows = o_flat.shape[0] // LANES
    o2d = o_flat.reshape(rows, LANES)
    i2d = i_flat.reshape(rows, LANES)

    if rows <= MAX_TILE_ROWS:
        # Single tile: one grid step on one core (block == full array is legal).
        num_cores, tile_rows, tiles_total = 1, rows, 1
    else:
        num_cores, tile_rows = NUM_CORES, MAX_TILE_ROWS
        tiles_total = pl.cdiv(rows, tile_rows)
    tiles_per_core = pl.cdiv(tiles_total, num_cores)

    virtual_tiles = num_cores * tiles_per_core
    need_clamp = virtual_tiles != tiles_total          # odd tile count
    need_mask = virtual_tiles * tile_rows != rows      # ragged or duplicated tile
    acc_rows = 8 if tile_rows % 8 == 0 else 1

    if need_clamp:
        # Over-allocated (fully masked) grid steps re-read the last valid block
        # so the DMA never targets an out-of-range block index.
        def in_index_map(c, i):
            return (jnp.minimum(c * tiles_per_core + i, tiles_total - 1), 0)
    else:
        def in_index_map(c, i):
            return (c * tiles_per_core + i, 0)

    kernel = _make_mse_sum_kernel(tile_rows, rows, tiles_per_core, need_mask)

    partial_sums = pl.pallas_call(
        kernel,
        out_shape=jax.ShapeDtypeStruct((num_cores, 1), jnp.float32),
        grid_spec=pltpu.PrefetchScalarGridSpec(
            num_scalar_prefetch=0,
            grid=(num_cores, tiles_per_core),
            in_specs=[
                pl.BlockSpec((tile_rows, LANES), in_index_map),
                pl.BlockSpec((tile_rows, LANES), in_index_map),
            ],
            out_specs=pl.BlockSpec(
                (1, 1), lambda c, i: (c, 0), memory_space=pltpu.SMEM
            ),
            scratch_shapes=[pltpu.VMEM((acc_rows, LANES), jnp.float32)],
        ),
        compiler_params=pltpu.CompilerParams(
            dimension_semantics=("parallel", "arbitrary"),
            # Footprint: 2 inputs x 2 pipeline buffers x <=1 MiB tile (+ acc),
            # comfortably inside every generation's VMEM.
            vmem_limit_bytes=32 * 1024 * 1024,
        ),
    )(o2d, i2d)

    # 'mean' reduction: add per-core partials, divide by true element count.
    return (jnp.sum(partial_sums) / jnp.float32(n_elems)).astype(jnp.float32)


if __name__ == "__main__":
    key = jax.random.PRNGKey(0)
    k1, k2 = jax.random.split(key)
    # Small NCHW shapes consistent with a typical conv-style batch.
    x_shape = (2, 4, 16, 16)
    output_batch = jax.random.normal(k1, x_shape, dtype=jnp.float32)
    input_batch = jax.random.normal(k2, x_shape, dtype=jnp.float32)

    loss = mse_loss(output_batch, input_batch)
    jax.block_until_ready(loss)

    # Reference check (plain JAX) for sanity.
    ref = jnp.mean((output_batch - input_batch) ** 2)
    assert jnp.allclose(loss, ref, rtol=1e-5, atol=1e-6), (loss, ref)

    print("KERNEL_OK")
</pallas_src>

<mosaic_0001>
module attributes {stable_mosaic.version = 11 : i64} {
  func.func @kernel(%arg0: i32, %arg1: i32, %arg2: memref<16x128xf32, #tpu.memory_space<vmem>>, %arg3: memref<16x128xf32, #tpu.memory_space<vmem>>, %arg4: memref<1x1xf32, #tpu.memory_space<smem>>, %arg5: memref<8x128xf32, #tpu.memory_space<vmem>>) attributes {dimension_semantics = [#tpu.dimension_semantics<parallel>, #tpu.dimension_semantics<arbitrary>], iteration_bounds = array<i64: 1, 1>, scalar_prefetch = 0 : i64, scratch_operands = 1 : i64, tpu.core_type = #tpu.core_type<tc>, window_params = [{transform_indices = @transform_0, window_bounds = array<i64: 16, 128>}, {transform_indices = @transform_1, window_bounds = array<i64: 16, 128>}, {transform_indices = @transform_2, window_bounds = array<i64: 1, 1>}]} {
    %c0_i32 = arith.constant 0 : i32
    %0 = arith.cmpi eq, %arg1, %c0_i32 : i32
    %1 = arith.extui %0 : i1 to i32
    %c0_i32_0 = arith.constant 0 : i32
    %2 = arith.cmpi ne, %1, %c0_i32_0 : i32
    scf.if %2 {
      %cst_10 = arith.constant 0.000000e+00 : f32
      %15 = vector.broadcast %cst_10 : f32 to vector<8x128xf32>
      %c0_11 = arith.constant 0 : index
      %c0_12 = arith.constant 0 : index
      %16 = vector.load %arg5[%c0_11, %c0_12] : memref<8x128xf32, #tpu.memory_space<vmem>>, vector<8x128xf32>
      tpu.vector_store %arg5[%c0_11, %c0_12], %15 {strides = array<i32>} : memref<8x128xf32, #tpu.memory_space<vmem>>, vector<8x128xf32>,
    } else {
    }
    %c0 = arith.constant 0 : index
    %c0_1 = arith.constant 0 : index
    %3 = vector.load %arg2[%c0, %c0_1] : memref<16x128xf32, #tpu.memory_space<vmem>>, vector<16x128xf32>
    %c0_2 = arith.constant 0 : index
    %c0_3 = arith.constant 0 : index
    %4 = vector.load %arg3[%c0_2, %c0_3] : memref<16x128xf32, #tpu.memory_space<vmem>>, vector<16x128xf32>
    %5 = arith.subf %3, %4 : vector<16x128xf32>
    %6 = arith.mulf %5, %5 : vector<16x128xf32>
    %7 = vector.shape_cast %6 : vector<16x128xf32> to vector<2x8x128xf32>
    %cst = arith.constant dense<0.000000e+00> : vector<8x128xf32>
    %8 = vector.multi_reduction <add>, %7, %cst [0] : vector<2x8x128xf32> to vector<8x128xf32>
    %c0_4 = arith.constant 0 : index
    %c0_5 = arith.constant 0 : index
    %9 = vector.load %arg5[%c0_4, %c0_5] : memref<8x128xf32, #tpu.memory_space<vmem>>, vector<8x128xf32>
    %10 = arith.addf %9, %8 : vector<8x128xf32>
    %c0_6 = arith.constant 0 : index
    %c0_7 = arith.constant 0 : index
    %11 = vector.load %arg5[%c0_6, %c0_7] : memref<8x128xf32, #tpu.memory_space<vmem>>, vector<8x128xf32>
    tpu.vector_store %arg5[%c0_6, %c0_7], %10 {strides = array<i32>} : memref<8x128xf32, #tpu.memory_space<vmem>>, vector<8x128xf32>,
    %c0_i32_8 = arith.constant 0 : i32
    %12 = arith.cmpi eq, %arg1, %c0_i32_8 : i32
    %13 = arith.extui %12 : i1 to i32
    %c0_i32_9 = arith.constant 0 : i32
    %14 = arith.cmpi ne, %13, %c0_i32_9 : i32
    scf.if %14 {
      %c0_10 = arith.constant 0 : index
      %c0_11 = arith.constant 0 : index
      %15 = vector.load %arg5[%c0_10, %c0_11] : memref<8x128xf32, #tpu.memory_space<vmem>>, vector<8x128xf32>
      %16 = vector.shape_cast %15 : vector<8x128xf32> to vector<1x8x128xf32>
      %cst_12 = arith.constant dense<0.000000e+00> : vector<1xf32>
      %17 = vector.multi_reduction <add>, %16, %cst_12 [1, 2] : vector<1x8x128xf32> to vector<1xf32>
      %18 = vector.shape_cast %17 : vector<1xf32> to vector<1x1x1xf32>
      %19 = vector.extract %18[0, 0, 0] : f32 from vector<1x1x1xf32>
      %c0_13 = arith.constant 0 : index
      %c0_14 = arith.constant 0 : index
      %20 = memref.load %arg4[%c0_13, %c0_14] : memref<1x1xf32, #tpu.memory_space<smem>>
      memref.store %19, %arg4[%c0_13, %c0_14] : memref<1x1xf32, #tpu.memory_space<smem>>
    } else {
    }
    return
  }
  func.func @transform_0(%arg0: i32, %arg1: i32) -> (i32, i32) {
    %c1_i32 = arith.constant 1 : i32
    %0 = arith.muli %arg0, %c1_i32 : i32
    %1 = arith.addi %0, %arg1 : i32
    %c0_i32 = arith.constant 0 : i32
    %c0_i32_0 = arith.constant 0 : i32
    return %1, %c0_i32 : i32, i32
  }
  func.func @transform_1(%arg0: i32, %arg1: i32) -> (i32, i32) {
    %c1_i32 = arith.constant 1 : i32
    %0 = arith.muli %arg0, %c1_i32 : i32
    %1 = arith.addi %0, %arg1 : i32
    %c0_i32 = arith.constant 0 : i32
    %c0_i32_0 = arith.constant 0 : i32
    return %1, %c0_i32 : i32, i32
  }
  func.func @transform_2(%arg0: i32, %arg1: i32) -> (i32, i32) {
    %c0_i32 = arith.constant 0 : i32
    %c0_i32_0 = arith.constant 0 : i32
    return %arg0, %c0_i32 : i32, i32
  }
}

</mosaic_0001>

<bundles_post_ra>
// kernel: tpu_custom_call.1
= control target key start
LH: loop header
LB: loop body
LE: loop exit
PB: predicated region body
PF: predicated region fallthrough
CT: control target
= control target key end

     0   :  { %7 = vsyncpa [#allocation4], 0  ;;  %s189_s0 = inlined_call_operand.hbm [shape: f32[16,128], index: 0, kind: input, shape index: {}]   ;;  %s190_s1 = inlined_call_operand.hbm [shape: f32[16,128], index: 1, kind: input, shape index: {}]   ;;  %s191_s2 = inlined_call_operand.hbm [shape: f32[1,1], index: 2, kind: output, shape index: {}]  }
   0x1   :  { %8 = vsyncpa [#allocation7], 0 }
   0x2   :  { %9 = vsyncpa [#allocation5], 0  ;;  %s160_s9 = smov [#allocation3]  }
   0x3   :  { %s19_s10 = sshll.u32 %s160_s9, 4  ;;  %s20_s10 = int_to_ptr.vmem [resolvable:$true] %s19_s10 }
   0x4   :  { %s114_s11 = scalar_lea.vmem %s20_s10, 256  ;;  %p119_p1 = scmp.lt.s32.totalorder %s20_s10, %s20_s10 }
   0x5   :  { %p115_p0 = scmp.ne.s32.totalorder %s20_s10, %s114_s11  ;;  %p120_p2 = scmp.lt.s32.totalorder %s114_s11, %s114_s11 }
   0x7   :  { %p121_p3 = por %p120_p2, %p119_p1 }
   0x9   :  { %p122_p4 = pnand %p121_p3, %p115_p0 }
   0xb   :  { %125 = shalt.err (!%p122_p4)
}
   0xc   :  { %s161_s12 = smov 128   ;;  %s162_s13 = smov 8  }
   0xd   :  { %25 = dma.hbm_to_vmem [thread:$0]  %s189_s0, 256, %s20_s10, [#allocation4], %s161_s12, %s161_s12, %s162_s13  }
   0xe   :  { %s163_s16 = smov [#allocation6]  }
   0xf   :  { %s35_s17 = sshll.u32 %s163_s16, 4  ;;  %s36_s17 = int_to_ptr.vmem [resolvable:$true] %s35_s17 }
  0x10   :  { %s134_s18 = scalar_lea.vmem %s36_s17, 256  ;;  %p139_p6 = scmp.lt.s32.totalorder %s36_s17, %s36_s17 }
  0x11   :  { %p135_p5 = scmp.ne.s32.totalorder %s36_s17, %s134_s18  ;;  %p140_p7 = scmp.lt.s32.totalorder %s134_s18, %s134_s18 }
  0x13   :  { %p141_p8 = por %p140_p7, %p139_p6 }
  0x15   :  { %p142_p9 = pnand %p141_p8, %p135_p5 }
  0x17   :  { %145 = shalt.err (!%p142_p9)
}
  0x18   :  { %41 = dma.hbm_to_vmem [thread:$0]  %s190_s1, 256, %s36_s17, [#allocation7], %s161_s12, %s161_s12, %s162_s13  }
  0x19   :  { %154 = dma.done.wait [#allocation4], 256  }
  0x1a   :  { %155 = vsyncadd [#allocation4], 4294967040 }
  0x1b   :  { %156 = dma.done.wait [#allocation7], 256  }
  0x1c   :  { %157 = vsyncadd [#allocation7], 4294967040  ;;  %v57_v0 = vld [vmem:[#allocation3] sm:$0xff]  ;;  %v58_v1 = vld [vmem:[#allocation3 + $0x8] sm:$0xff]  ;;  %s164_s1 = smov [#allocation8]  }
  0x1d   :  { %v59_v2 = vld [vmem:[#allocation6] sm:$0xff]  ;;  %v60_v3 = vld [vmem:[#allocation6 + $0x8] sm:$0xff] }
  0x1e   :  { %v61_v4 = vsub.f32 %v57_v0, %v59_v2  ;;  %v62_v5 = vsub.f32 %v58_v1, %v60_v3 }
  0x20   :  { %v63_v6 = vmul.f32 %v61_v4, %v61_v4  ;;  %v64_v7 = vmul.f32 %v62_v5, %v62_v5 }
  0x22   :  { %v65_v8 = vadd.f32 %v64_v7, %v63_v6 }
  0x24   :  { %73 = vadd.xlane.f32.xlu0 %v65_v8 }
  0xad   :  { %v74_v9 = vpop.xlane.xlu0 %73 }
  0xae   :  { %v75_v10 = vrot.slane %v74_v9, 4 }
  0xb0   :  { %v76_v11 = vadd.f32 %v75_v10, %v74_v9 }
  0xb2   :  { %v77_v12 = vrot.slane %v76_v11, 2 }
  0xb4   :  { %v78_v13 = vadd.f32 %v77_v12, %v76_v11 }
  0xb6   :  { %v79_v14 = vrot.slane %v78_v13, 1 }
  0xb8   :  { %v80_v15 = vadd.f32 %v79_v14, %v78_v13 }
  0xba   :  { %99 = vpush %v80_v15 }
  0xeb   :  { %s100_s0 = spop %99 }
  0xec   :  { %83 = sst [smem:[#allocation8]] %s100_s0 }
  0xed   :  { %91 = dma.smem_to_hbm %s164_s1, 16, %s191_s2, [#allocation5]  }
  0xee   :  { %158 = dma.done.wait [#allocation5], 16  }
  0xef   :  { %159 = vsyncadd [#allocation5], 4294967280 }
  0xf0   :  { %95 = sfence }
  0xf1   :  { %96 = vsyncpa [#allocation4], 1 }
  0xf2   :  { %97 = vsyncpa [#allocation7], 1 }
  0xf3   :  { %98 = vsyncpa [#allocation5], 1 }

</bundles_post_ra>
